<compile_context>
chip_gen: v7x
topology: tpu7x:2x2x1
jax: 0.10.0
libtpu: 0.0.40
codegen_flags: <defaults>
</compile_context>

<pallas_src>
import functools

import jax
import jax.numpy as jnp
from jax.experimental import pallas as pl
from jax.experimental.pallas import tpu as pltpu


# --------------------------------------------------------------------------- #
# Kernel
# --------------------------------------------------------------------------- #
def make_head_kernel(num_hidden):
    """Build the fused kernel for one (batch, N-tile) block.

    refs = [x_ref, w0, b0, w1, b1, ..., w_final, b_final, out_ref]
      x_ref   : (1, C_in, TN)        bf16
      w_i     : (C_out_i, C_in_i)    bf16   (BN folded for hidden layers)
      b_i     : (C_out_i, 1)         f32
      out_ref : (1, num_class, TN)   f32
    """

    def kernel(*refs):
        x_ref = refs[0]
        params = refs[1:-1]
        out_ref = refs[-1]

        h = x_ref[0]                                        # (C_in, TN) bf16
        pi = 0
        # Hidden layers: folded conv+BN, ReLU, re-cast to bf16 for the next
        # MXU pass (keeps activations half-width in vregs).
        for _ in range(num_hidden):
            w = params[pi][...]                             # (out, in)  bf16
            b = params[pi + 1][...]                         # (out, 1)   f32
            pi += 2
            y = jnp.dot(w, h, preferred_element_type=jnp.float32) + b
            h = jnp.maximum(y, 0.0).astype(jnp.bfloat16)
        # Final conv: no BN, no ReLU, f32 output.
        w = params[pi][...]
        b = params[pi + 1][...]
        y = jnp.dot(w, h, preferred_element_type=jnp.float32) + b
        out_ref[0] = y.astype(out_ref.dtype)

    return kernel


# --------------------------------------------------------------------------- #
# Parameter construction / folding
# --------------------------------------------------------------------------- #
def init_params(key, in_channel, hidden_channel, num_class):
    """Deterministic Conv1d + BatchNorm1d parameters (PyTorch-equivalent)."""
    hidden = []
    last = in_channel
    for out in hidden_channel:
        k1, k2, k3, k4, k5, k6, key = jax.random.split(key, 7)
        hidden.append(dict(
            w=jax.random.normal(k1, (out, last), jnp.float32) * 0.1,   # Conv1d (out,in,1) squeezed
            b=jax.random.normal(k2, (out,), jnp.float32) * 0.1,
            gamma=1.0 + 0.1 * jax.random.normal(k3, (out,), jnp.float32),
            beta=0.1 * jax.random.normal(k4, (out,), jnp.float32),
            mean=0.1 * jax.random.normal(k5, (out,), jnp.float32),
            var=jnp.abs(jax.random.normal(k6, (out,), jnp.float32)) + 0.5,
        ))
        last = out
    kf1, kf2, key = jax.random.split(key, 3)
    final = dict(
        w=jax.random.normal(kf1, (num_class, last), jnp.float32) * 0.1,
        b=jax.random.normal(kf2, (num_class,), jnp.float32) * 0.1,
    )
    return dict(hidden=hidden, final=final)


def _fold_hidden_layer(p, eps=1e-5):
    """Fold eval-mode BN into the 1x1 conv -> W (out,in) bf16, b (out,1) f32."""
    scale = p["gamma"] / jnp.sqrt(p["var"] + eps)
    w_fold = p["w"] * scale[:, None]
    b_fold = p["b"] * scale + (p["beta"] - p["mean"] * scale)
    return w_fold.astype(jnp.bfloat16), b_fold.reshape(-1, 1).astype(jnp.float32)


def _pick_n_tile(n, max_tile=2048):
    """Largest lane-dense tile (multiple of 128) dividing N, capped at max_tile."""
    if n <= max_tile:
        return n
    tn = (max_tile // 128) * 128
    while tn >= 128:
        if n % tn == 0:
            return tn
        tn -= 128
    return n


# --------------------------------------------------------------------------- #
# Wrapper
# --------------------------------------------------------------------------- #
@functools.partial(jax.jit, static_argnames=("n_tile",))
def classification_head_forward(points, params, n_tile=None):
    """points: (B, C_in, N) in PyTorch NCW layout.  Returns (B, num_class, N) f32."""
    B, C_in, N = points.shape
    hidden = params["hidden"]
    final = params["final"]
    num_hidden = len(hidden)
    num_class = final["w"].shape[0]

    # Pad N up to a lane multiple if needed (sliced back at the end).
    n_pad = (-N) % 128 if N % 128 != 0 else 0
    x = points.astype(jnp.bfloat16)
    if n_pad:
        x = jnp.pad(x, ((0, 0), (0, 0), (0, n_pad)))
    Np = N + n_pad

    tn = _pick_n_tile(Np) if n_tile is None else n_tile
    assert Np % tn == 0, (Np, tn)
    n_tiles = Np // tn

    # Fold BN into each hidden conv once, outside the kernel.
    param_arrays = []
    for p in hidden:
        w, b = _fold_hidden_layer(p)
        param_arrays += [w, b]
    param_arrays += [final["w"].astype(jnp.bfloat16),
                     final["b"].reshape(-1, 1).astype(jnp.float32)]

    # Activation tile streams per grid step; params are VMEM-resident
    # (index_map constant in both grid axes -> DMA'd once, reused).
    in_specs = [pl.BlockSpec((1, C_in, tn), lambda b, nt: (b, 0, nt))]
    inputs = [x]
    for a in param_arrays:
        inputs.append(a)
        in_specs.append(
            pl.BlockSpec(a.shape, lambda b, nt, _nd=a.ndim: (0,) * _nd))

    kernel = make_head_kernel(num_hidden)

    out = pl.pallas_call(
        kernel,
        out_shape=jax.ShapeDtypeStruct((B, num_class, Np), jnp.float32),
        grid=(B, n_tiles),
        in_specs=in_specs,
        out_specs=pl.BlockSpec((1, num_class, tn), lambda b, nt: (b, 0, nt)),
        compiler_params=pltpu.CompilerParams(
            dimension_semantics=("parallel", "parallel")),
    )(*inputs)

    if n_pad:
        out = out[:, :, :N]
    return out  # (B, num_class, N) -- PyTorch NCW, no transpose needed


# --------------------------------------------------------------------------- #
# Pure-JAX reference (eval-mode BN), f32
# --------------------------------------------------------------------------- #
def reference_forward(points, params):
    with jax.default_matmul_precision("highest"):
        h = points.astype(jnp.float32)
        for p in params["hidden"]:
            y = jnp.einsum("oc,bcn->bon", p["w"], h) + p["b"][None, :, None]
            scale = p["gamma"] / jnp.sqrt(p["var"] + 1e-5)
            y = (y - p["mean"][None, :, None]) * scale[None, :, None] \
                + p["beta"][None, :, None]
            h = jnp.maximum(y, 0.0)
        return jnp.einsum("oc,bcn->bon", params["final"]["w"], h) \
            + params["final"]["b"][None, :, None]


if __name__ == "__main__":
    key = jax.random.PRNGKey(0)
    B, C_in, N = 2, 16, 512
    hidden_channel = [64, 32]
    num_class = 10

    kx, kp = jax.random.split(key)
    points = jax.random.normal(kx, (B, C_in, N), jnp.float32)
    params = init_params(kp, C_in, hidden_channel, num_class)

    out = classification_head_forward(points, params, n_tile=256)
    out = jax.block_until_ready(out)

    ref = reference_forward(points, params)
    assert out.shape == (B, num_class, N), out.shape
    err = float(jnp.max(jnp.abs(out - ref)))
    # bf16 MXU matmuls vs f32 reference -> allow 2e-2 tolerance
    assert jnp.allclose(out, ref, rtol=2e-2, atol=2e-2), err

    print("KERNEL_OK")
</pallas_src>

<mosaic_0001>
module attributes {stable_mosaic.version = 11 : i64} {
  func.func @kernel(%arg0: i32, %arg1: i32, %arg2: memref<1x16x256xbf16, #tpu.memory_space<vmem>>, %arg3: memref<64x16xbf16, #tpu.memory_space<vmem>>, %arg4: memref<64x1xf32, #tpu.memory_space<vmem>>, %arg5: memref<32x64xbf16, #tpu.memory_space<vmem>>, %arg6: memref<32x1xf32, #tpu.memory_space<vmem>>, %arg7: memref<10x32xbf16, #tpu.memory_space<vmem>>, %arg8: memref<10x1xf32, #tpu.memory_space<vmem>>, %arg9: memref<1x10x256xf32, #tpu.memory_space<vmem>>) attributes {dimension_semantics = [#tpu.dimension_semantics<parallel>, #tpu.dimension_semantics<parallel>], iteration_bounds = array<i64: 2, 2>, scalar_prefetch = 0 : i64, scratch_operands = 0 : i64, tpu.core_type = #tpu.core_type<tc>, window_params = [{transform_indices = @transform_0, window_bounds = array<i64: 1, 16, 256>}, {pipeline_mode = #tpu.pipeline_mode<synchronous>, transform_indices = @transform_1, window_bounds = array<i64: 64, 16>}, {pipeline_mode = #tpu.pipeline_mode<synchronous>, transform_indices = @transform_2, window_bounds = array<i64: 64, 1>}, {pipeline_mode = #tpu.pipeline_mode<synchronous>, transform_indices = @transform_3, window_bounds = array<i64: 32, 64>}, {pipeline_mode = #tpu.pipeline_mode<synchronous>, transform_indices = @transform_4, window_bounds = array<i64: 32, 1>}, {pipeline_mode = #tpu.pipeline_mode<synchronous>, transform_indices = @transform_5, window_bounds = array<i64: 10, 32>}, {pipeline_mode = #tpu.pipeline_mode<synchronous>, transform_indices = @transform_6, window_bounds = array<i64: 10, 1>}, {transform_indices = @transform_7, window_bounds = array<i64: 1, 10, 256>}]} {
    %c0 = arith.constant 0 : index
    %c0_0 = arith.constant 0 : index
    %c0_1 = arith.constant 0 : index
    %0 = vector.load %arg2[%c0, %c0_0, %c0_1] : memref<1x16x256xbf16, #tpu.memory_space<vmem>>, vector<1x16x256xbf16>
    %1 = vector.shape_cast %0 : vector<1x16x256xbf16> to vector<16x256xbf16>
    %c0_2 = arith.constant 0 : index
    %c0_3 = arith.constant 0 : index
    %2 = vector.load %arg3[%c0_2, %c0_3] : memref<64x16xbf16, #tpu.memory_space<vmem>>, vector<64x16xbf16>
    %c0_4 = arith.constant 0 : index
    %c0_5 = arith.constant 0 : index
    %3 = vector.load %arg4[%c0_4, %c0_5] : memref<64x1xf32, #tpu.memory_space<vmem>>, vector<64x1xf32>
    %cst = arith.constant dense<0.000000e+00> : vector<64x256xf32>
    %4 = tpu.matmul %2, %1, %cst {dimension_numbers = #tpu.dot_dimension_numbers<[1], [0], [0], [1], [0, 0, 1, 1], [], []>} : vector<64x16xbf16>, vector<16x256xbf16>, vector<64x256xf32> -> vector<64x256xf32>
    %5 = vector.broadcast %3 : vector<64x1xf32> to vector<64x256xf32>
    %6 = arith.addf %4, %5 : vector<64x256xf32>
    %cst_6 = arith.constant 0.000000e+00 : f32
    %7 = vector.broadcast %cst_6 : f32 to vector<64x256xf32>
    %8 = arith.maximumf %6, %7 : vector<64x256xf32>
    %9 = arith.truncf %8 : vector<64x256xf32> to vector<64x256xbf16>
    %c0_7 = arith.constant 0 : index
    %c0_8 = arith.constant 0 : index
    %10 = vector.load %arg5[%c0_7, %c0_8] : memref<32x64xbf16, #tpu.memory_space<vmem>>, vector<32x64xbf16>
    %c0_9 = arith.constant 0 : index
    %c0_10 = arith.constant 0 : index
    %11 = vector.load %arg6[%c0_9, %c0_10] : memref<32x1xf32, #tpu.memory_space<vmem>>, vector<32x1xf32>
    %cst_11 = arith.constant dense<0.000000e+00> : vector<32x256xf32>
    %12 = tpu.matmul %10, %9, %cst_11 {dimension_numbers = #tpu.dot_dimension_numbers<[1], [0], [0], [1], [0, 0, 1, 1], [], []>} : vector<32x64xbf16>, vector<64x256xbf16>, vector<32x256xf32> -> vector<32x256xf32>
    %13 = vector.broadcast %11 : vector<32x1xf32> to vector<32x256xf32>
    %14 = arith.addf %12, %13 : vector<32x256xf32>
    %cst_12 = arith.constant 0.000000e+00 : f32
    %15 = vector.broadcast %cst_12 : f32 to vector<32x256xf32>
    %16 = arith.maximumf %14, %15 : vector<32x256xf32>
    %17 = arith.truncf %16 : vector<32x256xf32> to vector<32x256xbf16>
    %c0_13 = arith.constant 0 : index
    %c0_14 = arith.constant 0 : index
    %18 = vector.load %arg7[%c0_13, %c0_14] : memref<10x32xbf16, #tpu.memory_space<vmem>>, vector<10x32xbf16>
    %c0_15 = arith.constant 0 : index
    %c0_16 = arith.constant 0 : index
    %19 = vector.load %arg8[%c0_15, %c0_16] : memref<10x1xf32, #tpu.memory_space<vmem>>, vector<10x1xf32>
    %cst_17 = arith.constant dense<0.000000e+00> : vector<10x256xf32>
    %20 = tpu.matmul %18, %17, %cst_17 {dimension_numbers = #tpu.dot_dimension_numbers<[1], [0], [0], [1], [0, 0, 1, 1], [], []>} : vector<10x32xbf16>, vector<32x256xbf16>, vector<10x256xf32> -> vector<10x256xf32>
    %21 = vector.broadcast %19 : vector<10x1xf32> to vector<10x256xf32>
    %22 = arith.addf %20, %21 : vector<10x256xf32>
    %c0_18 = arith.constant 0 : index
    %c0_19 = arith.constant 0 : index
    %c0_20 = arith.constant 0 : index
    %23 = vector.load %arg9[%c0_18, %c0_19, %c0_20] : memref<1x10x256xf32, #tpu.memory_space<vmem>>, vector<1x10x256xf32>
    %24 = vector.shape_cast %23 : vector<1x10x256xf32> to vector<10x256xf32>
    %25 = vector.shape_cast %22 : vector<10x256xf32> to vector<1x10x256xf32>
    tpu.vector_store %arg9[%c0_18, %c0_19, %c0_20], %25 {strides = array<i32>} : memref<1x10x256xf32, #tpu.memory_space<vmem>>, vector<1x10x256xf32>,
    return
  }
  func.func @transform_0(%arg0: i32, %arg1: i32) -> (i32, i32, i32) {
    %c0_i32 = arith.constant 0 : i32
    %c0_i32_0 = arith.constant 0 : i32
    return %arg0, %c0_i32, %arg1 : i32, i32, i32
  }
  func.func @transform_1(%arg0: i32, %arg1: i32) -> (i32, i32) {
    %c0_i32 = arith.constant 0 : i32
    %c0_i32_0 = arith.constant 0 : i32
    %c0_i32_1 = arith.constant 0 : i32
    return %c0_i32, %c0_i32_0 : i32, i32
  }
  func.func @transform_2(%arg0: i32, %arg1: i32) -> (i32, i32) {
    %c0_i32 = arith.constant 0 : i32
    %c0_i32_0 = arith.constant 0 : i32
    %c0_i32_1 = arith.constant 0 : i32
    return %c0_i32, %c0_i32_0 : i32, i32
  }
  func.func @transform_3(%arg0: i32, %arg1: i32) -> (i32, i32) {
    %c0_i32 = arith.constant 0 : i32
    %c0_i32_0 = arith.constant 0 : i32
    %c0_i32_1 = arith.constant 0 : i32
    return %c0_i32, %c0_i32_0 : i32, i32
  }
  func.func @transform_4(%arg0: i32, %arg1: i32) -> (i32, i32) {
    %c0_i32 = arith.constant 0 : i32
    %c0_i32_0 = arith.constant 0 : i32
    %c0_i32_1 = arith.constant 0 : i32
    return %c0_i32, %c0_i32_0 : i32, i32
  }
  func.func @transform_5(%arg0: i32, %arg1: i32) -> (i32, i32) {
    %c0_i32 = arith.constant 0 : i32
    %c0_i32_0 = arith.constant 0 : i32
    %c0_i32_1 = arith.constant 0 : i32
    return %c0_i32, %c0_i32_0 : i32, i32
  }
  func.func @transform_6(%arg0: i32, %arg1: i32) -> (i32, i32) {
    %c0_i32 = arith.constant 0 : i32
    %c0_i32_0 = arith.constant 0 : i32
    %c0_i32_1 = arith.constant 0 : i32
    return %c0_i32, %c0_i32_0 : i32, i32
  }
  func.func @transform_7(%arg0: i32, %arg1: i32) -> (i32, i32, i32) {
    %c0_i32 = arith.constant 0 : i32
    %c0_i32_0 = arith.constant 0 : i32
    return %arg0, %c0_i32, %arg1 : i32, i32, i32
  }
}

</mosaic_0001>

<bundles_post_ra>
// kernel: classification_head_forward.1
= control target key start
LH: loop header
LB: loop body
LE: loop exit
PB: predicated region body
PF: predicated region fallthrough
CT: control target
= control target key end

     0   :  { %s1019_s24 = smov 0   ;;  %s1021_s25 = smov 0   ;;  %s1195_s0 = inlined_call_operand.vmem [shape: bf16[2,16,512], index: 0, kind: input, shape index: {}]   ;;  %s1196_s1 = inlined_call_operand.vmem [shape: bf16[64,16], index: 1, kind: input, shape index: {}]   ;;  %s1197_s2 = inlined_call_operand.vmem [shape: f32[64,1], index: 2, kind: input, shape index: {}]   ;;  %s1198_s3 = inlined_call_operand.vmem [shape: bf16[32,64], index: 3, kind: input, shape index: {}]   ;;  %s1199_s4 = inlined_call_operand.vmem [shape: f32[32,1], index: 4, kind: input, shape index: {}]   ;;  %s1200_s5 = inlined_call_operand.vmem [shape: bf16[10,32], index: 5, kind: input, shape index: {}]   ;;  %s1201_s6 = inlined_call_operand.vmem [shape: f32[10,1], index: 6, kind: input, shape index: {}]   ;;  %s1202_s7 = inlined_call_operand.vmem [shape: f32[2,10,512], index: 7, kind: output, shape index: {}]  }
   0x1   :  { %s1023_s26 = smov 0   ;;  %s1025_s27 = smov 0  }
   0x2   :  { %s1027_s28 = smov 0   ;;  %s1029_s29 = smov 0  }
   0x3   :  { %s1031_s30 = smov 0  }
   0x4 LB: > { %s26_s8 = sadd.s32 1, %s968_s28  ;;  %s29_s9 = sadd.s32 1, %s972_s29  ;;  %s976_s30 = sphi %s1031_s30, %s17_s30   ;;  %s972_s29 = sphi %s1029_s29, %s1209_s29   ;;  %s968_s28 = sphi %s1027_s28, %s1208_s28   ;;  %s964_s27 = sphi %s1025_s27, %s1207_s27   ;;  %s960_s26 = sphi %s1023_s26, %s1206_s26   ;;  %s956_s25 = sphi %s1021_s25, %s1205_s25   ;;  %s952_s24 = sphi %s1019_s24, %s1204_s24  }
   0x5   : > { %p27_p0 = scmp.ge.s32.totalorder %s26_s8, 2  ;;  %s820_s10 = sadd.s32 4294967295, %s976_s30  }
   0x6   : > { %p45_p1 = scmp.ne.s32.totalorder %s956_s25, %s952_s24  ;;  %p46_p2 = scmp.eq.s32.totalorder %s976_s30, 0 }
   0x7   : > { %s1211_s8 = smov (%p27_p0, %s26_s8), 0  ;;  %s1213_s9 = smov (!%p27_p0, %s29_s9), %s972_s29 }
   0x8   : > { %p31_p3 = scmp.ge.s32.totalorder %s1213_s9, 2  ;;  %p203_p4 = scmp.eq.s32.totalorder %s820_s10, 3 }
   0x9   : > { %s34_s11 = ssub.s32 %s968_s28, %s1211_s8  ;;  %p47_p5 = por %p46_p2, %p45_p1 }
   0xa   : > { %s1215_s9 = smov (%p31_p3, %s1213_s9), 0  ;;  %p1067_p6 = por %p203_p4, %p45_p1 }
   0xb   : > { %s33_s13 = ssub.s32 %s972_s29, %s1215_s9  ;;  %s38_s15 = sadd.s32 1, %s956_s25 }
   0xc   : > { %s35_s14 = sor.u32 %s34_s11, %s33_s13  ;;  %p823_p8 = scmp.ge.s32.totalorder %s976_s30, 4 }
   0xd   : > { %p36_p7 = scmp.eq.s32.totalorder %s35_s14, 0 }
   0xe   : > { %243 = sbr.rel (%p823_p8) target bundleno = 29 (0x1d), region = 40 }
   0xf   : > { %s1075_s16 = scalar_select %p36_p7, %s956_s25, %s38_s15  }
  0x15   : > { %246 = sbr.rel (!%p47_p5) target bundleno = 29 (0x1d), region = 44  ;;  %s248_s17 = sand.u32 (%p47_p5), 1, %s956_s25  }
  0x16   : > { %s825_s18 = sshll.u32 (%p47_p5), %s968_s28, 1  ;;  %s824_s19 = sshll.u32 (%p47_p5), %s248_s17, 4 }
  0x17   : > { %s826_s20 = sshll.u32 (%p47_p5), %s972_s29, 3  ;;  %s250_s13 = scalar_lea.vmem (%p47_p5), [#allocation2], %s824_s19 }
  0x18   : > { %s253_s21 = sadd.s32 (%p47_p5), %s826_s20, %s825_s18 }
  0x19   : > { %s827_s22 = sshll.u32 (%p47_p5), %s253_s21, 2 }
  0x1a   : > { %s255_s11 = scalar_lea.vmem (%p47_p5), %s1195_s0, %s827_s22 }
  0x1b   : > { %v285_v0 = vld [vmem:[%s255_s11] sm:$0xff] (%p47_p5)  ;;  %v287_v1 = vld [vmem:[%s255_s11 + $0x10] sm:$0xff] (%p47_p5) }
  0x1c   : > { %286 = vst [vmem:[%s250_s13] sm:$0xff] %v285_v0  ;;  %288 = vst [vmem:[%s250_s13 + $0x8] sm:$0xff] %v287_v1 }
  0x1d PF: > { %p828_p9 = scmp.ge.s32.totalorder %s976_s30, 1  ;;  %p293_p10 = scmp.lt.s32.totalorder %s976_s30, 5 }
  0x1f   : > { %p294_p11 = pnand %p828_p9, %p293_p10 }
  0x20   : > { %s300_s14 = sand.u32 (!%p294_p11), 1, %s952_s24   ;;  %v978_v2 = vmov (!%p294_p11), 0   ;;  %v915_v5 = vld [vmem:[%s1196_s1] sm:$0xff] (!%p294_p11)   ;;  %vm421_vm0 = vcmask (!%p294_p11), 130048   ;;  %v345_v7 = vld [vmem:[%s1197_s2 + $0x10] sm:$0xff] (!%p294_p11)  ;;  %v344_v8 = vld [vmem:[%s1197_s2 + $0x8] sm:$0xff] (!%p294_p11) }
  0x21   : > { %297 = sbr.rel (%p294_p11) target bundleno = 748 (0x2ec), region = 82  ;;  %s829_s15 = sshll.u32 (!%p294_p11), %s300_s14, 4  ;;  %466 = vmatprep.mubr.bf16.mxu0 (!%p294_p11), %v978_v2  ;;  %910 = vset.pattern.permute.xlu0 (!%p294_p11), %v978_v2  ;;  %v343_v6 = vld [vmem:[%s1197_s2] sm:$0xff] (!%p294_p11)  ;;  %v346_v9 = vld [vmem:[%s1197_s2 + $0x18] sm:$0xff] (!%p294_p11)  ;;  %v348_v11 = vld [vmem:[%s1197_s2 + $0x28] sm:$0xff] (!%p294_p11)  ;;  %vm569_vm1 = vcmask (!%p294_p11), 523264  }
  0x22   : > { %911 = vset.pattern.permute.xlu1 (!%p294_p11), %v978_v2  ;;  %608 = vmatprep.mubr.bf16.mxu1 (!%p294_p11), %v978_v2  ;;  %s302_s17 = scalar_lea.vmem (!%p294_p11), [#allocation2], %s829_s15  ;;  %v347_v10 = vld [vmem:[%s1197_s2 + $0x20] sm:$0xff] (!%p294_p11)  ;;  %v916_v12 = vld [vmem:[%s1196_s1 + $0x8] sm:$0xff] (!%p294_p11)   ;;  %v349_v13 = vld [vmem:[%s1197_s2 + $0x30] sm:$0xff] (!%p294_p11)  ;;  %vm660_vm2 = vcmask (!%p294_p11), 261120   ;;  %s830_s15 = sshll.u32 (!%p294_p11), %s300_s14, 5 }
  0x23   : > { %v912_v3 = vld [vmem:[%s302_s17 + $0x4] ss:$8 sps:$4 sm:$0xff] (!%p294_p11)   ;;  %v914_v4 = vld [vmem:[%s302_s17] ss:$8 sps:$4 sm:$0xff] (!%p294_p11)   ;;  %353 = vperm.xlu0 (!%p294_p11), %910, %v343_v6   ;;  %363 = vperm.xlu1 (!%p294_p11), %911, %v345_v7   ;;  %s329_s17 = scalar_lea.vmem (!%p294_p11), [#allocation3], %s830_s15 }
  0x24   : > { %434 = vmatprep.subr.bf16.mxu0 (!%p294_p11), %v912_v3  ;;  %v350_v14 = vld [vmem:[%s1197_s2 + $0x38] sm:$0xff] (!%p294_p11)  ;;  %v535_v15 = vld [vmem:[%s1199_s4] sm:$0xff] (!%p294_p11)  ;;  %v536_v16 = vld [vmem:[%s1199_s4 + $0x8] sm:$0xff] (!%p294_p11) }
  0x25   : > { %435 = vmatpush1.bf16.msra.mxu0 (!%p294_p11), %v914_v4  ;;  %v917_v17 = vld [vmem:[%s1196_s1 + $0x10] sm:$0xff] (!%p294_p11)   ;;  %v538_v19 = vld [vmem:[%s1199_s4 + $0x18] sm:$0xff] (!%p294_p11)  ;;  %v643_v20 = vld [vmem:[%s1201_s6] sm:$0xff] (!%p294_p11) }
  0x26   : > { %v537_v18 = vld [vmem:[%s1199_s4 + $0x10] sm:$0xff] (!%p294_p11)  ;;  %v644_v21 = vld [vmem:[%s1201_s6 + $0x8] sm:$0x3] (!%p294_p11)  ;;  %v918_v22 = vld [vmem:[%s1196_s1 + $0x18] sm:$0xff] (!%p294_p11)  }
  0x27   : > { %358 = vperm.xlu0 (!%p294_p11), %910, %v344_v8   ;;  %368 = vperm.xlu1 (!%p294_p11), %911, %v346_v9  }
  0x28   : > { %837 = vmatmul.mubr.msk.bf16.vlgmr.msra.gmra.mrb[0].mxu0 %vm421_vm0, %v915_v5  ;;  %s848_s24 = sshll.u32 (%p1067_p6), %s960_s26, 1  ;;  %s849_s14 = sshll.u32 (%p1067_p6), %s964_s27, 3 }
  0x29   : > { %476 = vmatprep.mubr.bf16.mxu0 %v978_v2  ;;  %s720_s18 = sadd.s32 (%p1067_p6), %s849_s14, %s848_s24 }
  0x2a   : > { %s850_s19 = sshll.u32 (%p1067_p6), %s720_s18, 3 }
  0x2b   : > { %373 = vperm.xlu0 %910, %v347_v10   ;;  %378 = vperm.xlu1 %911, %v348_v11   ;;  %s722_s22 = scalar_lea.vmem (%p1067_p6), %s1202_s7, %s850_s19 }
  0x2f   : > { %383 = vperm.xlu0 %910, %v349_v13   ;;  %388 = vperm.xlu1 %911, %v350_v14  }
  0x30   : > { %838 = vmatmul.mubr.msk.bf16.gmra.mrb[4].mxu0 %vm421_vm0, %v916_v12 }
  0x31   : > { %486 = vmatprep.mubr.bf16.mxu0 %v978_v2 }
  0x33   : > { %541 = vperm.xlu0 %910, %v535_v15   ;;  %546 = vperm.xlu1 %911, %v536_v16  }
  0x37   : > { %551 = vperm.xlu0 %910, %v537_v18   ;;  %556 = vperm.xlu1 %911, %v538_v19  }
  0x38   : > { %839 = vmatmul.mubr.msk.bf16.gmra.mrb[8].mxu0 %vm421_vm0, %v917_v17 }
  0x39   : > { %496 = vmatprep.mubr.bf16.mxu0 %v978_v2 }
  0x3b   : > { %647 = vperm.xlu0 %910, %v643_v20   ;;  %652 = vperm.xlu1 %911, %v644_v21  }
  0x40   : > { %840 = vmatmul.mubr.msk.bf16.gmra.mrb[12].mxu0 %vm421_vm0, %v918_v22 }
  0xa2   : > { %v354_v23 = vpop.permute.xlu0 %353  ;;  %v364_v32 = vpop.permute.xlu1 %363 }
  0xa6   : > { %v359_v27 = vpop.permute.xlu0 %358  ;;  %v369_v43 = vpop.permute.xlu1 %368 }
  0xaa   : > { %v374_v54 = vpop.permute.xlu0 %373  ;;  %v379_v59 = vpop.permute.xlu1 %378 }
  0xae   : > { %v384_v7 = vpop.permute.xlu0 %383  ;;  %v389_v12 = vpop.permute.xlu1 %388 }
  0xfb   : > { %v468_v24 = vpop.f32.mrb[0].mxu0 }
  0xfc   : > { %v469_v25 = vadd.f32 %v468_v24, %v354_v23  ;;  %v470_v26 = vpop.f32.mrb[1].mxu0  ;;  %v919_v24 = vld [vmem:[%s1198_s3] sm:$0xff]  }
  0xfd   : > { %v471_v28 = vadd.f32 %v470_v26, %v354_v23  ;;  %v472_v29 = vpop.f32.mrb[2].mxu0  ;;  %v542_v26 = vpop.permute.xlu0 %541 }
  0xfe   : > { %v473_v30 = vadd.f32 %v472_v29, %v359_v27  ;;  %v474_v31 = vpop.f32.mrb[3].mxu0  ;;  %v507_v34 = vmax.f32 %v469_v25, 0.0  ;;  %v920_v25 = vld [vmem:[%s1198_s3 + $0x8] sm:$0xff]  }
  0xff   : > { %v475_v33 = vadd.f32 %v474_v31, %v359_v27  ;;  %v508_v36 = vmax.f32 %v471_v28, 0.0 }
 0x100   : > { %v509_v35 = vmax.f32 %v473_v30, 0.0  ;;  %v547_v30 = vpop.permute.xlu1 %546 }
 0x101   : > { %v510_v37 = vmax.f32 %v475_v33, 0.0 }
 0x102   : > { %v523_v38 = vpack.c.bf16 %v509_v35, %v507_v34 }
 0x103   : > { %v478_v39 = vpop.f32.mrb[4].mxu0  ;;  %v524_v40 = vpack.c.bf16 %v510_v37, %v508_v36 }
 0x104   : > { %v479_v41 = vadd.f32 %v478_v39, %v364_v32  ;;  %v480_v42 = vpop.f32.mrb[5].mxu0 }
 0x105   : > { %v481_v44 = vadd.f32 %v480_v42, %v364_v32  ;;  %v482_v45 = vpop.f32.mrb[6].mxu0  ;;  %576 = vmatprep.subr.bf16.mxu1 %v524_v40 }
 0x106   : > { %v483_v46 = vadd.f32 %v482_v45, %v369_v43  ;;  %v484_v47 = vpop.f32.mrb[7].mxu0  ;;  %577 = vmatpush1.bf16.msra.mxu1 %v523_v38  ;;  %v511_v49 = vmax.f32 %v479_v41, 0.0  ;;  %v552_v41 = vpop.permute.xlu0 %551 }
 0x107   : > { %v485_v48 = vadd.f32 %v484_v47, %v369_v43  ;;  %v512_v51 = vmax.f32 %v481_v44, 0.0  ;;  %v557_v45 = vpop.permute.xlu1 %556 }
 0x108   : > { %v513_v50 = vmax.f32 %v483_v46, 0.0 }
 0x109   : > { %v514_v52 = vmax.f32 %v485_v48, 0.0 }
 0x10a   : > { %v525_v53 = vpack.c.bf16 %v513_v50, %v511_v49 }
 0x10b   : > { %v526_v55 = vpack.c.bf16 %v514_v52, %v512_v51  ;;  %v488_v56 = vpop.f32.mrb[8].mxu0 }
 0x10c   : > { %v489_v57 = vadd.f32 %v488_v56, %v374_v54  ;;  %v490_v58 = vpop.f32.mrb[9].mxu0 }
 0x10d   : > { %v491_v60 = vadd.f32 %v490_v58, %v374_v54  ;;  %v492_v61 = vpop.f32.mrb[10].mxu0  ;;  %578 = vmatprep.subr.bf16.mxu1 %v526_v55  ;;  %v648_v58 = vpop.permute.xlu0 %647 }
 0x10e   : > { %v493_v62 = vadd.f32 %v492_v61, %v379_v59  ;;  %v494_v63 = vpop.f32.mrb[11].mxu0  ;;  %579 = vmatpush1.bf16.msra.mxu1 %v525_v53  ;;  %v515_v1 = vmax.f32 %v489_v57, 0.0  ;;  %v921_v57 = vld [vmem:[%s1200_s5] sm:$0x1f]  }
 0x10f   : > { %v495_v0 = vadd.f32 %v494_v63, %v379_v59  ;;  %v516_v4 = vmax.f32 %v491_v60, 0.0 }
 0x110   : > { %v517_v3 = vmax.f32 %v493_v62, 0.0  ;;  %v653_v62 = vpop.permute.xlu1 %652 }
 0x111   : > { %v518_v5 = vmax.f32 %v495_v0, 0.0 }
 0x112   : > { %v527_v6 = vpack.c.bf16 %v517_v3, %v515_v1 }
 0x113   : > { %v528_v8 = vpack.c.bf16 %v518_v5, %v516_v4  ;;  %v498_v9 = vpop.f32.mrb[12].mxu0 }
 0x114   : > { %v499_v10 = vadd.f32 %v498_v9, %v384_v7  ;;  %v500_v11 = vpop.f32.mrb[13].mxu0 }
 0x115   : > { %v501_v13 = vadd.f32 %v500_v11, %v384_v7  ;;  %v502_v14 = vpop.f32.mrb[14].mxu0  ;;  %580 = vmatprep.subr.bf16.mxu1 %v528_v8 }
 0x116   : > { %v503_v15 = vadd.f32 %v502_v14, %v389_v12  ;;  %v504_v16 = vpop.f32.mrb[15].mxu0  ;;  %581 = vmatpush1.bf16.msra.mxu1 %v527_v6  ;;  %v519_v18 = vmax.f32 %v499_v10, 0.0 }
 0x117   : > { %v505_v17 = vadd.f32 %v504_v16, %v389_v12  ;;  %v520_v20 = vmax.f32 %v501_v13, 0.0 }
 0x118   : > { %v521_v19 = vmax.f32 %v503_v15, 0.0 }
 0x119   : > { %v522_v21 = vmax.f32 %v505_v17, 0.0 }
 0x11a   : > { %v529_v22 = vpack.c.bf16 %v521_v19, %v519_v18 }
 0x11b   : > { %v530_v23 = vpack.c.bf16 %v522_v21, %v520_v20 }
 0x11d   : > { %582 = vmatprep.subr.bf16.mxu1 %v530_v23 }
 0x11e   : > { %583 = vmatpush1.bf16.msra.mxu1 %v529_v22 }
 0x121   : > { %843 = vmatmul.mubr.msk.bf16.vlgmr.msra.gmra.mrb[0].mxu1 %vm569_vm1, %v919_v24 }
 0x122   : > { %618 = vmatprep.mubr.bf16.mxu1 %v978_v2 }
 0x129   : > { %844 = vmatmul.mubr.msk.bf16.gmra.mrb[4].mxu1 %vm569_vm1, %v920_v25 }
 0x12a   : > { %696 = vmatprep.mubr.bf16.mxu1 %v978_v2 }
 0x1f4   : > { %v610_v27 = vpop.f32.mrb[0].mxu1 }
 0x1f5   : > { %v611_v28 = vadd.f32 %v610_v27, %v542_v26  ;;  %v612_v29 = vpop.f32.mrb[1].mxu1 }
 0x1f6   : > { %v613_v31 = vadd.f32 %v612_v29, %v542_v26  ;;  %v614_v32 = vpop.f32.mrb[2].mxu1 }
 0x1f7   : > { %v615_v33 = vadd.f32 %v614_v32, %v547_v30  ;;  %v616_v34 = vpop.f32.mrb[3].mxu1  ;;  %v629_v36 = vmax.f32 %v611_v28, 0.0 }
 0x1f8   : > { %v617_v35 = vadd.f32 %v616_v34, %v547_v30  ;;  %v630_v38 = vmax.f32 %v613_v31, 0.0 }
 0x1f9   : > { %v631_v37 = vmax.f32 %v615_v33, 0.0 }
 0x1fa   : > { %v632_v39 = vmax.f32 %v617_v35, 0.0 }
 0x1fb   : > { %v637_v40 = vpack.c.bf16 %v631_v37, %v629_v36 }
 0x1fc   : > { %v638_v42 = vpack.c.bf16 %v632_v39, %v630_v38  ;;  %v620_v43 = vpop.f32.mrb[4].mxu1 }
 0x1fd   : > { %v621_v44 = vadd.f32 %v620_v43, %v552_v41  ;;  %v622_v2 = vpop.f32.mrb[5].mxu1 }
 0x1fe   : > { %v623_v46 = vadd.f32 %v622_v2, %v552_v41  ;;  %v624_v47 = vpop.f32.mrb[6].mxu1  ;;  %664 = vmatprep.subr.bf16.mxu1 %v638_v42 }
 0x1ff   : > { %v625_v48 = vadd.f32 %v624_v47, %v557_v45  ;;  %v626_v49 = vpop.f32.mrb[7].mxu1  ;;  %665 = vmatpush1.bf16.msra.mxu1 %v637_v40  ;;  %v633_v51 = vmax.f32 %v621_v44, 0.0 }
 0x200   : > { %v627_v50 = vadd.f32 %v626_v49, %v557_v45  ;;  %v634_v53 = vmax.f32 %v623_v46, 0.0 }
 0x201   : > { %v635_v52 = vmax.f32 %v625_v48, 0.0 }
 0x202   : > { %v636_v54 = vmax.f32 %v627_v50, 0.0 }
 0x203   : > { %v639_v55 = vpack.c.bf16 %v635_v52, %v633_v51 }
 0x204   : > { %v640_v56 = vpack.c.bf16 %v636_v54, %v634_v53 }
 0x206   : > { %666 = vmatprep.subr.bf16.mxu1 %v640_v56 }
 0x207   : > { %667 = vmatpush1.bf16.msra.mxu1 %v639_v55 }
 0x20a   : > { %846 = vmatmul.mubr.msk.bf16.vlgmr.msra.gmra.mrb[8].mxu1 %vm660_vm2, %v921_v57 }
 0x2dd   : > { %v698_v59 = vpop.f32.mrb[8].mxu1  ;;  %717 = sbr.rel (!%p1067_p6) target bundleno = 748 (0x2ec), region = 90 }
 0x2de   : > { %v699_v60 = vadd.f32 %v698_v59, %v648_v58  ;;  %v700_v61 = vpop.f32.mrb[9].mxu1 }
 0x2df   : > { %v701_v63 = vadd.f32 %v700_v61, %v648_v58  ;;  %v702_v0 = vpop.f32.mrb[10].mxu1 }
 0x2e0   : > { %707 = vst [vmem:[%s329_s17] sm:$0xff] %v699_v60  ;;  %v703_v1 = vadd.f32 %v702_v0, %v653_v62  ;;  %v704_v3 = vpop.f32.mrb[11].mxu1 }
 0x2e1   : > { %708 = vst [vmem:[%s329_s17 + $0x8] sm:$0xff] %v701_v63  ;;  %v705_v4 = vadd.f32 %v704_v3, %v653_v62 }
 0x2e2   : > { %709 = vst [vmem:[%s329_s17 + $0x10] sm:$0x3] %v703_v1 }
 0x2e3   : > { %710 = vst [vmem:[%s329_s17 + $0x18] sm:$0x3] %v705_v4 }
 0x2e7   : > { %v735_v5 = vld [vmem:[%s329_s17] sm:$0xff] }
 0x2e8   : > { %v737_v6 = vld [vmem:[%s329_s17 + $0x8] sm:$0xff]  ;;  %736 = vst [vmem:[%s722_s22] sm:$0xff] %v735_v5 }
 0x2e9   : > { %v739_v7 = vld [vmem:[%s329_s17 + $0x10] sm:$0xff]  ;;  %738 = vst [vmem:[%s722_s22 + $0x8] sm:$0xff] %v737_v6 }
 0x2ea   : > { %v741_v8 = vld [vmem:[%s329_s17 + $0x18] sm:$0xff]  ;;  %740 = vst [vmem:[%s722_s22 + $0x20] sm:$0xff] %v739_v7 }
 0x2eb   : > { %742 = vst [vmem:[%s722_s22 + $0x28] sm:$0xff] %v741_v8 }
 0x2ec PF: > { %s17_s30 = sadd.s32 1, %s976_s30   ;;  %s1204_s24 = smov %s956_s25 }
 0x2ed   : > { %p14_p12 = scmp.ge.s32.totalorder %s17_s30, 6   ;;  %s1205_s25 = smov %s1075_s16 }
 0x2ee   : > { %s1206_s26 = smov %s968_s28  ;;  %s1207_s27 = smov %s972_s29 }
 0x2ef   : > { %s1208_s28 = smov %s1211_s8  ;;  %s1209_s29 = smov %s1215_s9 }
 0x2f0   :  { %16 = sbr.rel (!%p14_p12) target bundleno = 4 (0x4), region = 144 }

</bundles_post_ra>
